<compile_context>
chip_gen: v5e
topology: v5e:2x2
jax: 0.10.0
libtpu: 0.0.40
codegen_flags: <defaults>
</compile_context>

<pallas_src>
import functools
import math

import jax
import jax.numpy as jnp
from jax.experimental import pallas as pl
from jax.experimental.pallas import tpu as pltpu


def _round_up(a, b):
    return pl.cdiv(a, b) * b


def _gelu_exact(x):
    # nn.GELU() default = exact erf formulation (matches the PyTorch module).
    return 0.5 * x * (1.0 + jax.lax.erf(x * (1.0 / math.sqrt(2.0))))


def gpt2_mlp_kernel(x_ref, wfc_ref, bfc_ref, wproj_ref, bproj_ref, o_ref,
                    acc_ref, *, approximate_gelu):
    hk = pl.program_id(1)

    @pl.when(hk == 0)
    def _():
        acc_ref[...] = jnp.zeros_like(acc_ref)

    # (tm, E) x (E, th) -> (tm, th): bf16 operands, f32 accumulation on MXU.
    h = jnp.dot(x_ref[...], wfc_ref[...], preferred_element_type=jnp.float32)
    h = h + bfc_ref[...]                        # f32 bias add
    if approximate_gelu:
        h = jax.nn.gelu(h, approximate=True)    # tanh form -> EUP slot
    else:
        h = _gelu_exact(h)                      # faithful to nn.GELU() default

    # (tm, th) x (th, E) -> accumulate (tm, E) into f32 VMEM scratch.
    acc_ref[...] += jnp.dot(h.astype(wproj_ref.dtype), wproj_ref[...],
                            preferred_element_type=jnp.float32)

    @pl.when(hk == pl.num_programs(1) - 1)
    def _():
        # TODO(synk): nn.Dropout is identity in eval mode; training-mode
        # dropout (pltpu.prng_random_bits mask) is not emitted here.
        o_ref[...] = (acc_ref[...] + bproj_ref[...]).astype(o_ref.dtype)


def gpt2_mlp(x, w_fc, b_fc, w_proj, b_proj, *, tm=256, th=512,
             matmul_dtype=jnp.bfloat16, approximate_gelu=False):
    """x: (B, T, E); w_fc: (E, H); b_fc: (H,); w_proj: (H, E); b_proj: (E,)."""
    B, T, E = x.shape
    H = w_fc.shape[1]
    M = B * T

    # Row tile: multiple of 8, capped at the (8-aligned) problem size.
    tm = _round_up(min(tm, _round_up(M, 8)), 8)
    M_pad = _round_up(M, tm)

    # Hidden tile: a multiple of 128 that divides H, else fall back to full H.
    if th >= H or H % 128 != 0:
        th = H
    else:
        th = max(c for c in range(128, th + 1, 128) if H % c == 0)

    x2 = x.reshape(M, E).astype(matmul_dtype)
    if M_pad != M:
        x2 = jnp.pad(x2, ((0, M_pad - M), (0, 0)))
    wfc = w_fc.astype(matmul_dtype)
    wproj = w_proj.astype(matmul_dtype)
    bfc2 = b_fc.reshape(1, H).astype(jnp.float32)
    bproj2 = b_proj.reshape(1, E).astype(jnp.float32)

    grid = (M_pad // tm, H // th)
    out_dtype = x.dtype
    w_itemsize = jnp.dtype(matmul_dtype).itemsize
    cost = pl.CostEstimate(
        flops=4 * M_pad * E * H,
        transcendentals=M_pad * H,
        bytes_accessed=(M_pad * E * w_itemsize                          # x
                        + M_pad * E * jnp.dtype(out_dtype).itemsize     # out
                        + grid[0] * (2 * E * H * w_itemsize             # weights
                                     + 4 * (H + E))),                   # biases
    )

    out = pl.pallas_call(
        functools.partial(gpt2_mlp_kernel, approximate_gelu=approximate_gelu),
        out_shape=jax.ShapeDtypeStruct((M_pad, E), out_dtype),
        grid_spec=pltpu.PrefetchScalarGridSpec(
            num_scalar_prefetch=0,
            grid=grid,
            in_specs=[
                pl.BlockSpec((tm, E), lambda i, k: (i, 0)),   # x rows
                pl.BlockSpec((E, th), lambda i, k: (0, k)),   # W_fc^T chunk
                pl.BlockSpec((1, th), lambda i, k: (0, k)),   # b_fc chunk
                pl.BlockSpec((th, E), lambda i, k: (k, 0)),   # W_proj^T chunk
                pl.BlockSpec((1, E), lambda i, k: (0, 0)),    # b_proj
            ],
            out_specs=pl.BlockSpec((tm, E), lambda i, k: (i, 0)),
            scratch_shapes=[pltpu.VMEM((tm, E), jnp.float32)],
        ),
        compiler_params=pltpu.CompilerParams(
            dimension_semantics=("parallel", "arbitrary"),
            vmem_limit_bytes=48 * 1024 * 1024,
        ),
        cost_estimate=cost,
    )(x2, wfc, bfc2, wproj, bproj2)

    return out[:M].reshape(B, T, E)


def _reference(x, w_fc, b_fc, w_proj, b_proj, matmul_dtype=jnp.bfloat16,
               approximate_gelu=False):
    """Plain-JAX reference with the same bf16-operand / f32-accum discipline."""
    B, T, E = x.shape
    xb = x.reshape(-1, E).astype(matmul_dtype)
    h = jnp.dot(xb, w_fc.astype(matmul_dtype),
                preferred_element_type=jnp.float32) + b_fc.astype(jnp.float32)
    h = jax.nn.gelu(h, approximate=True) if approximate_gelu else _gelu_exact(h)
    y = jnp.dot(h.astype(matmul_dtype), w_proj.astype(matmul_dtype),
                preferred_element_type=jnp.float32) + b_proj.astype(jnp.float32)
    return y.reshape(B, T, E).astype(x.dtype)


if __name__ == "__main__":
    key = jax.random.PRNGKey(0)

    def make_inputs(k, B, T, E, ratio):
        H = E * ratio
        kx, k1, k2, k3, k4 = jax.random.split(k, 5)
        x = jax.random.normal(kx, (B, T, E), dtype=jnp.float32)
        lim_fc = 1.0 / math.sqrt(E)
        lim_pr = 1.0 / math.sqrt(H)
        w_fc = jax.random.uniform(k1, (E, H), jnp.float32, -lim_fc, lim_fc)
        b_fc = jax.random.uniform(k2, (H,), jnp.float32, -lim_fc, lim_fc)
        w_proj = jax.random.uniform(k3, (H, E), jnp.float32, -lim_pr, lim_pr)
        b_proj = jax.random.uniform(k4, (E,), jnp.float32, -lim_pr, lim_pr)
        return x, w_fc, b_fc, w_proj, b_proj

    k1, k2 = jax.random.split(key)

    # 1) Toy GPT2MLP config: batch=2, seq=8, embed_dim=32, mlp_ratio=4.
    args = make_inputs(k1, 2, 8, 32, 4)
    out = gpt2_mlp(*args)
    jax.block_until_ready(out)
    ref = _reference(*args)
    assert jnp.allclose(out, ref, atol=1e-4, rtol=1e-4), "mismatch (toy config)"

    # 2) Tiling exercise: ragged M=3*13=39 (row padding), E=128, H=512, forced
    #    small tiles so the grid has multiple row blocks and hidden chunks
    #    (exercises the accumulator + padding paths).
    args = make_inputs(k2, 3, 13, 128, 4)
    out = gpt2_mlp(*args, tm=16, th=256)
    jax.block_until_ready(out)
    ref = _reference(*args)
    assert jnp.allclose(out, ref, atol=1e-4, rtol=1e-4), "mismatch (tiled config)"

    print("KERNEL_OK")
</pallas_src>

<mosaic_0001>
module attributes {stable_mosaic.version = 11 : i64} {
  func.func @gpt2_mlp_kernel(%arg0: i32, %arg1: i32, %arg2: memref<16x32xbf16, #tpu.memory_space<vmem>>, %arg3: memref<32x128xbf16, #tpu.memory_space<vmem>>, %arg4: memref<1x128xf32, #tpu.memory_space<vmem>>, %arg5: memref<128x32xbf16, #tpu.memory_space<vmem>>, %arg6: memref<1x32xf32, #tpu.memory_space<vmem>>, %arg7: memref<16x32xf32, #tpu.memory_space<vmem>>, %arg8: memref<16x32xf32, #tpu.memory_space<vmem>>) attributes {dimension_semantics = [#tpu.dimension_semantics<parallel>, #tpu.dimension_semantics<arbitrary>], iteration_bounds = array<i64: 1, 1>, scalar_prefetch = 0 : i64, scratch_operands = 1 : i64, tpu.core_type = #tpu.core_type<tc>, window_params = [{transform_indices = @transform_0, window_bounds = array<i64: 16, 32>}, {transform_indices = @transform_1, window_bounds = array<i64: 32, 128>}, {transform_indices = @transform_2, window_bounds = array<i64: 1, 128>}, {transform_indices = @transform_3, window_bounds = array<i64: 128, 32>}, {pipeline_mode = #tpu.pipeline_mode<synchronous>, transform_indices = @transform_4, window_bounds = array<i64: 1, 32>}, {transform_indices = @transform_5, window_bounds = array<i64: 16, 32>}]} {
    %c0_i32 = arith.constant 0 : i32
    %0 = arith.cmpi eq, %arg1, %c0_i32 : i32
    %1 = arith.extui %0 : i1 to i32
    %c0_i32_0 = arith.constant 0 : i32
    %2 = arith.cmpi ne, %1, %c0_i32_0 : i32
    scf.if %2 {
      %cst_18 = arith.constant 0.000000e+00 : f32
      %26 = vector.broadcast %cst_18 : f32 to vector<16x32xf32>
      %c0_19 = arith.constant 0 : index
      %c0_20 = arith.constant 0 : index
      %27 = vector.load %arg8[%c0_19, %c0_20] : memref<16x32xf32, #tpu.memory_space<vmem>>, vector<16x32xf32>
      tpu.vector_store %arg8[%c0_19, %c0_20], %26 {strides = array<i32>} : memref<16x32xf32, #tpu.memory_space<vmem>>, vector<16x32xf32>,
    } else {
    }
    %c0 = arith.constant 0 : index
    %c0_1 = arith.constant 0 : index
    %3 = vector.load %arg2[%c0, %c0_1] : memref<16x32xbf16, #tpu.memory_space<vmem>>, vector<16x32xbf16>
    %c0_2 = arith.constant 0 : index
    %c0_3 = arith.constant 0 : index
    %4 = vector.load %arg3[%c0_2, %c0_3] : memref<32x128xbf16, #tpu.memory_space<vmem>>, vector<32x128xbf16>
    %cst = arith.constant dense<0.000000e+00> : vector<16x128xf32>
    %5 = tpu.matmul %3, %4, %cst {dimension_numbers = #tpu.dot_dimension_numbers<[1], [0], [0], [1], [0, 0, 1, 1], [], []>} : vector<16x32xbf16>, vector<32x128xbf16>, vector<16x128xf32> -> vector<16x128xf32>
    %c0_4 = arith.constant 0 : index
    %c0_5 = arith.constant 0 : index
    %6 = vector.load %arg4[%c0_4, %c0_5] : memref<1x128xf32, #tpu.memory_space<vmem>>, vector<1x128xf32>
    %7 = vector.broadcast %6 : vector<1x128xf32> to vector<16x128xf32>
    %8 = arith.addf %5, %7 : vector<16x128xf32>
    %cst_6 = arith.constant 5.000000e-01 : f32
    %9 = vector.broadcast %cst_6 : f32 to vector<16x128xf32>
    %10 = arith.mulf %9, %8 : vector<16x128xf32>
    %cst_7 = arith.constant 0.707106769 : f32
    %11 = vector.broadcast %cst_7 : f32 to vector<16x128xf32>
    %12 = arith.mulf %8, %11 : vector<16x128xf32>
    %13 = math.erf %12 : vector<16x128xf32>
    %cst_8 = arith.constant 1.000000e+00 : f32
    %14 = vector.broadcast %cst_8 : f32 to vector<16x128xf32>
    %15 = arith.addf %14, %13 : vector<16x128xf32>
    %16 = arith.mulf %10, %15 : vector<16x128xf32>
    %c0_9 = arith.constant 0 : index
    %c0_10 = arith.constant 0 : index
    %17 = vector.load %arg8[%c0_9, %c0_10] : memref<16x32xf32, #tpu.memory_space<vmem>>, vector<16x32xf32>
    %18 = arith.truncf %16 : vector<16x128xf32> to vector<16x128xbf16>
    %c0_11 = arith.constant 0 : index
    %c0_12 = arith.constant 0 : index
    %19 = vector.load %arg5[%c0_11, %c0_12] : memref<128x32xbf16, #tpu.memory_space<vmem>>, vector<128x32xbf16>
    %cst_13 = arith.constant dense<0.000000e+00> : vector<16x32xf32>
    %20 = tpu.matmul %18, %19, %cst_13 {dimension_numbers = #tpu.dot_dimension_numbers<[1], [0], [0], [1], [0, 0, 1, 1], [], []>} : vector<16x128xbf16>, vector<128x32xbf16>, vector<16x32xf32> -> vector<16x32xf32>
    %21 = arith.addf %17, %20 : vector<16x32xf32>
    %c0_14 = arith.constant 0 : index
    %c0_15 = arith.constant 0 : index
    %22 = vector.load %arg8[%c0_14, %c0_15] : memref<16x32xf32, #tpu.memory_space<vmem>>, vector<16x32xf32>
    tpu.vector_store %arg8[%c0_14, %c0_15], %21 {strides = array<i32>} : memref<16x32xf32, #tpu.memory_space<vmem>>, vector<16x32xf32>,
    %c0_i32_16 = arith.constant 0 : i32
    %23 = arith.cmpi eq, %arg1, %c0_i32_16 : i32
    %24 = arith.extui %23 : i1 to i32
    %c0_i32_17 = arith.constant 0 : i32
    %25 = arith.cmpi ne, %24, %c0_i32_17 : i32
    scf.if %25 {
      %c0_18 = arith.constant 0 : index
      %c0_19 = arith.constant 0 : index
      %26 = vector.load %arg8[%c0_18, %c0_19] : memref<16x32xf32, #tpu.memory_space<vmem>>, vector<16x32xf32>
      %c0_20 = arith.constant 0 : index
      %c0_21 = arith.constant 0 : index
      %27 = vector.load %arg6[%c0_20, %c0_21] : memref<1x32xf32, #tpu.memory_space<vmem>>, vector<1x32xf32>
      %28 = vector.broadcast %27 : vector<1x32xf32> to vector<16x32xf32>
      %29 = arith.addf %26, %28 : vector<16x32xf32>
      %c0_22 = arith.constant 0 : index
      %c0_23 = arith.constant 0 : index
      %30 = vector.load %arg7[%c0_22, %c0_23] : memref<16x32xf32, #tpu.memory_space<vmem>>, vector<16x32xf32>
      tpu.vector_store %arg7[%c0_22, %c0_23], %29 {strides = array<i32>} : memref<16x32xf32, #tpu.memory_space<vmem>>, vector<16x32xf32>,
    } else {
    }
    return
  }
  func.func @transform_0(%arg0: i32, %arg1: i32) -> (i32, i32) {
    %c0_i32 = arith.constant 0 : i32
    %c0_i32_0 = arith.constant 0 : i32
    return %arg0, %c0_i32 : i32, i32
  }
  func.func @transform_1(%arg0: i32, %arg1: i32) -> (i32, i32) {
    %c0_i32 = arith.constant 0 : i32
    %c0_i32_0 = arith.constant 0 : i32
    return %c0_i32, %arg1 : i32, i32
  }
  func.func @transform_2(%arg0: i32, %arg1: i32) -> (i32, i32) {
    %c0_i32 = arith.constant 0 : i32
    %c0_i32_0 = arith.constant 0 : i32
    return %c0_i32, %arg1 : i32, i32
  }
  func.func @transform_3(%arg0: i32, %arg1: i32) -> (i32, i32) {
    %c0_i32 = arith.constant 0 : i32
    %c0_i32_0 = arith.constant 0 : i32
    return %arg1, %c0_i32 : i32, i32
  }
  func.func @transform_4(%arg0: i32, %arg1: i32) -> (i32, i32) {
    %c0_i32 = arith.constant 0 : i32
    %c0_i32_0 = arith.constant 0 : i32
    %c0_i32_1 = arith.constant 0 : i32
    return %c0_i32, %c0_i32_0 : i32, i32
  }
  func.func @transform_5(%arg0: i32, %arg1: i32) -> (i32, i32) {
    %c0_i32 = arith.constant 0 : i32
    %c0_i32_0 = arith.constant 0 : i32
    return %arg0, %c0_i32 : i32, i32
  }
}

</mosaic_0001>

<bundles_post_ra>
// kernel: tpu_custom_call.1
= control target key start
LH: loop header
LB: loop body
LE: loop exit
PB: predicated region body
PF: predicated region fallthrough
CT: control target
= control target key end

     0   :  { %s473_s0 = inlined_call_operand.vmem [shape: bf16[16,32], index: 0, kind: input, shape index: {}]   ;;  %s474_s1 = inlined_call_operand.vmem [shape: bf16[32,128], index: 1, kind: input, shape index: {}]   ;;  %s475_s2 = inlined_call_operand.vmem [shape: f32[1,128], index: 2, kind: input, shape index: {}]   ;;  %s476_s3 = inlined_call_operand.vmem [shape: bf16[128,32], index: 3, kind: input, shape index: {}]   ;;  %s477_s4 = inlined_call_operand.vmem [shape: f32[1,32], index: 4, kind: input, shape index: {}]   ;;  %s478_s5 = inlined_call_operand.hbm [shape: f32[16,32], index: 5, kind: output, shape index: {}]  }
   0x1   :  { %v327_v0 = vld [vmem:[%s474_s1 + $0x8] sm:$0xff] }
   0x2   :  { %10 = vsyncpa [#allocation4], 0  ;;  %66 = vmatpush.bf16.msra.mxu0 %v327_v0  ;;  %v326_v1 = vld [vmem:[%s474_s1] sm:$0xff]  ;;  %vm26_vm0 = vcmask 261120   ;;  %v335_v4 = vld [vmem:[%s476_s3 + $0x38] sm:$0xff]  ;;  %v372_v54 = vmov 0.0  }
   0x3   :  { %v325_v2 = vld [vmem:[%s473_s0] sm:$0xff]  ;;  %229 = vmatpush.bf16.msra.mxu1 %v335_v4  ;;  %v334_v8 = vld [vmem:[%s476_s3 + $0x30] sm:$0xff]  ;;  %v333_v10 = vld [vmem:[%s476_s3 + $0x28] sm:$0xff]  ;;  %27 = vst.msk [vmem:[#allocation2] sm:$0xff] %vm26_vm0, %v372_v54  ;;  %s373_s15 = smov [#allocation3]   ;;  %s266_s19 = sshll.u32 %s478_s5, 4  ;;  %s267_s19 = int_to_ptr.hbm [resolvable:$true] %s266_s19 }
   0x4   :  { %v340_v3 = vld [vmem:[%s475_s2] ss:$0 sm:$0xff]  ;;  %v331_v21 = vld [vmem:[%s476_s3 + $0x18] sm:$0xff]  ;;  %v330_v27 = vld [vmem:[%s476_s3 + $0x10] sm:$0xff]  ;;  %28 = vst.msk [vmem:[#allocation2 + $0x8] sm:$0xff] %vm26_vm0, %v372_v54  ;;  %s264_s16 = sshll.u32 %s373_s15, 4  ;;  %s265_s16 = int_to_ptr.vmem [resolvable:$true] %s264_s16 }
   0x5   :  { %v332_v15 = vld [vmem:[%s476_s3 + $0x20] sm:$0xff]  ;;  %v329_v35 = vld [vmem:[%s476_s3 + $0x8] sm:$0xff]  ;;  %s375_s20 = smov 8  }
   0x6   :  { %67 = vmatpush.bf16.msra.mxu0 %v326_v1  ;;  %v328_v42 = vld [vmem:[%s476_s3] sm:$0xff] }
   0x7   :  { %230 = vmatpush.bf16.msra.mxu1 %v334_v8 }
   0x9   :  { %290 = vmatmul.msk.bf16.vlgmr.msra.gmra.mxu0 %vm26_vm0, %v325_v2 }
   0xb   :  { %231 = vmatpush.bf16.msra.mxu1 %v333_v10 }
   0xf   :  { %232 = vmatpush.bf16.msra.mxu1 %v332_v15 }
  0x13   :  { %233 = vmatpush.bf16.msra.mxu1 %v331_v21 }
  0x17   :  { %234 = vmatpush.bf16.msra.mxu1 %v330_v27 }
  0x1b   :  { %235 = vmatpush.bf16.msra.mxu1 %v329_v35  ;;  %v162_v35 = vld [vmem:[#allocation2] sm:$0xff] }
  0x1f   :  { %236 = vmatpush.bf16.msra.mxu1 %v328_v42 }
  0x86   :  { %v69_v5 = vpop.f32.mrf.mxu0 }
  0x87   :  { %v422_v6 = vadd.f32 %v340_v3, %v69_v5 }
  0x89   :  { %v425_v7 = vmul.f32 0.70710677, %v422_v6 }
  0x8b   :  { %v78_v9 = vmul.f32 %v425_v7, %v425_v7 }
  0x8d   :  { %v79_v11 = vmin.f32 %v78_v9, 16.0 }
  0x8e   :  { %v71_v12 = vpop.f32.mrf.mxu0 }
  0x8f   :  { %v80_v13 = vmul.f32 2.1237322e-06, %v79_v11  ;;  %v435_v14 = vadd.f32 %v340_v3, %v71_v12  ;;  %v91_v16 = vmul.f32 3.8918573e-05, %v79_v11 }
  0x91   :  { %v81_v17 = vadd.f32 0.00028619796, %v80_v13  ;;  %v441_v18 = vmul.f32 0.70710677, %v435_v14  ;;  %v92_v19 = vadd.f32 0.001143296, %v91_v16 }
  0x93   :  { %v118_v20 = vmul.f32 %v441_v18, %v441_v18  ;;  %v82_v22 = vmul.f32 %v81_v17, %v79_v11  ;;  %v93_v23 = vmul.f32 %v92_v19, %v79_v11 }
  0x95   :  { %v119_v24 = vmin.f32 %v118_v20, 16.0  ;;  %v94_v25 = vadd.f32 0.014752088, %v93_v23  ;;  %v83_v29 = vadd.f32 0.0036580483, %v82_v22 }
  0x97   :  { %v120_v26 = vmul.f32 2.1237322e-06, %v119_v24  ;;  %v131_v28 = vmul.f32 3.8918573e-05, %v119_v24  ;;  %v95_v30 = vmul.f32 %v94_v25, %v79_v11  ;;  %v84_v37 = vmul.f32 %v83_v29, %v79_v11 }
  0x98   :  { %v74_v29 = vmul.f32 0.5, %v422_v6 }
  0x99   :  { %v121_v31 = vadd.f32 0.00028619796, %v120_v26  ;;  %v132_v32 = vadd.f32 0.001143296, %v131_v28  ;;  %v96_v33 = vadd.f32 0.112945676, %v95_v30 }
  0x9a   :  { %v85_v44 = vadd.f32 0.05243302, %v84_v37  ;;  %v75_v30 = vmul.f32 0.5, %v435_v14 }
  0x9b   :  { %v122_v34 = vmul.f32 %v121_v31, %v119_v24  ;;  %v133_v36 = vmul.f32 %v132_v32, %v119_v24  ;;  %v97_v38 = vmul.f32 %v96_v33, %v79_v11 }
  0x9c   :  { %v86_v50 = vmul.f32 %v85_v44, %v79_v11 }
  0x9d   :  { %v123_v39 = vadd.f32 0.0036580483, %v122_v34  ;;  %v134_v40 = vadd.f32 0.014752088, %v133_v36  ;;  %v98_v41 = vadd.f32 0.4994258, %v97_v38 }
  0x9e   :  { %v87_v55 = vadd.f32 0.18741608, %v86_v50  ;;  %v341_v38 = vld [vmem:[%s477_s4] ss:$0 sm:$0xff]  ;;  %s374_s4 = smov 128  }
  0x9f   :  { %v135_v43 = vmul.f32 %v134_v40, %v119_v24  ;;  %v99_v45 = vmul.f32 %v98_v41, %v79_v11  ;;  %v124_v46 = vmul.f32 %v123_v39, %v119_v24 }
  0xa0   :  { %v88_v60 = vmul.f32 %v87_v55, %v79_v11 }
  0xa1   :  { %v136_v47 = vadd.f32 0.112945676, %v135_v43  ;;  %v100_v48 = vadd.f32 1.0, %v99_v45  ;;  %v125_v51 = vadd.f32 0.05243302, %v124_v46 }
  0xa2   :  { %v89_v2 = vadd.f32 1.1283791, %v88_v60 }
  0xa3   :  { %v137_v49 = vmul.f32 %v136_v47, %v119_v24  ;;  %342 = vrcp.f32 %v100_v48  ;;  %v126_v56 = vmul.f32 %v125_v51, %v119_v24  ;;  %v112_v63 = vand.u32 2147483648, %v100_v48 }
  0xa4   :  { %v110_v1 = vand.u32 2147483647, %v100_v48  ;;  %vm106_vm2 = vweird.f32 %v100_v48  ;;  %v90_v12 = vmul.f32 %v89_v2, %v425_v7 }
  0xa5   :  { %v138_v52 = vadd.f32 0.4994258, %v137_v49  ;;  %v127_v61 = vadd.f32 0.18741608, %v126_v56  ;;  %v113_v8 = vor.u32 1.1754944e-38, %v112_v63 }
  0xa6   :  { %vm111_vm4 = vcmp.eq.f32.partialorder %v110_v1, 8.507059e+37 }
  0xa7   :  { %v139_v53 = vmul.f32 %v138_v52, %v119_v24  ;;  %v128_v4 = vmul.f32 %v127_v61, %v119_v24 }
  0xa9   :  { %v140_v57 = vadd.f32 1.0, %v139_v53  ;;  %v343_v58 = vpop.eup %342  ;;  %v129_v15 = vadd.f32 1.1283791, %v128_v4 }
  0xaa   :  { %v102_v59 = vmul.f32 %v343_v58, %v100_v48  ;;  %vm107_vm1 = vweird.f32 %v343_v58 }
  0xab   :  { %344 = vrcp.f32 %v140_v57  ;;  %vm108_vm3 = vmor %vm106_vm2, %vm107_vm1  ;;  %v152_v16 = vand.u32 2147483648, %v140_v57  ;;  %v150_v20 = vand.u32 2147483647, %v140_v57  ;;  %vm146_vm6 = vweird.f32 %v140_v57 }
  0xac   :  { %v103_v62 = vsub.f32 1.0, %v102_v59  ;;  %v130_v23 = vmul.f32 %v129_v15, %v441_v18  ;;  %v163_v18 = vld [vmem:[#allocation2 + $0x8] sm:$0xff] }
  0xad   :  { %v153_v22 = vor.u32 1.1754944e-38, %v152_v16  ;;  %vm151_vm8 = vcmp.eq.f32.partialorder %v150_v20, 8.507059e+37 }
  0xae   :  { %v104_v0 = vmul.f32 %v343_v58, %v103_v62 }
  0xb0   :  { %v105_v5 = vadd.f32 %v343_v58, %v104_v0 }
  0xb1   :  { %v345_v3 = vpop.eup %344 }
  0xb2   :  { %v142_v9 = vmul.f32 %v345_v3, %v140_v57  ;;  %v109_v10 = vsel %vm108_vm3, %v343_v58, %v105_v5  ;;  %vm147_vm5 = vweird.f32 %v345_v3 }
  0xb3   :  { %v114_v13 = vsel %vm111_vm4, %v113_v8, %v109_v10  ;;  %vm148_vm7 = vmor %vm146_vm6, %vm147_vm5 }
  0xb4   :  { %v143_v11 = vsub.f32 1.0, %v142_v9  ;;  %v115_v17 = vmul.f32 %v114_v13, %v90_v12 }
  0xb6   :  { %v144_v19 = vmul.f32 %v345_v3, %v143_v11  ;;  %v291_v24 = vclamps-f32 %v115_v17, 1.0 }
  0xb8   :  { %v145_v21 = vadd.f32 %v345_v3, %v144_v19  ;;  %v158_v28 = vadd.f32 1.0, %v291_v24 }
  0xba   :  { %v149_v25 = vsel %vm148_vm7, %v345_v3, %v145_v21  ;;  %v160_v32 = vmul.f32 %v158_v28, %v74_v29 }
  0xbb   :  { %v154_v26 = vsel %vm151_vm8, %v153_v22, %v149_v25 }
  0xbc   :  { %v155_v27 = vmul.f32 %v154_v26, %v130_v23 }
  0xbe   :  { %v292_v7 = vclamps-f32 %v155_v27, 1.0 }
  0xc0   :  { %v159_v31 = vadd.f32 1.0, %v292_v7 }
  0xc2   :  { %v161_v33 = vmul.f32 %v159_v31, %v75_v30 }
  0xc4   :  { %v164_v34 = vpack.c.bf16 %v161_v33, %v160_v32 }
  0xc6   :  { %237 = vmatmul.bf16.vlgmr.msra.gmra.mxu1 %v164_v34 }
 0x143   :  { %v238_v36 = vpop.f32.mrf.mxu1 }
 0x144   :  { %v243_v37 = vadd.f32 %v238_v36, %v162_v35 }
 0x146   :  { %245 = vst.msk [vmem:[#allocation2] sm:$0xff] %vm26_vm0, %v243_v37 }
 0x14b   :  { %v240_v39 = vpop.f32.mrf.mxu1 }
 0x14c   :  { %v244_v40 = vadd.f32 %v240_v39, %v163_v18 }
 0x14d   :  { %v250_v6 = vld [vmem:[#allocation2] sm:$0xff] }
 0x14e   :  { %246 = vst.msk [vmem:[#allocation2 + $0x8] sm:$0xff] %vm26_vm0, %v244_v40  ;;  %v256_v14 = vadd.f32 %v341_v38, %v250_v6 }
 0x150   :  { %258 = vst.msk [vmem:[#allocation3] sm:$0xff] %vm26_vm0, %v256_v14 }
 0x155   :  { %v251_v41 = vld [vmem:[#allocation2 + $0x8] sm:$0xff] }
 0x156   :  { %v257_v42 = vadd.f32 %v341_v38, %v251_v41 }
 0x158   :  { %259 = vst.msk [vmem:[#allocation3 + $0x8] sm:$0xff] %vm26_vm0, %v257_v42 }
 0x159   :  { %272 = dma.vmem_to_hbm [thread:$0]  %s265_s16, 256, %s267_s19, [#allocation4], %s374_s4, %s374_s4, %s375_s20  }
 0x15a   :  { %370 = dma.done.wait [#allocation4], 256  }
 0x15b   :  { %371 = vsyncadd [#allocation4], 4294967040 }
 0x15c   :  { %277 = vsyncpa [#allocation4], 1 }

</bundles_post_ra>
